<compile_context>
chip_gen: v7x
topology: tpu7x:2x2x1
jax: 0.10.0
libtpu: 0.0.40
codegen_flags: <defaults>
</compile_context>

<pallas_src>
import functools

import jax
import jax.numpy as jnp
import numpy as np
from jax import lax
from jax.experimental import pallas as pl
from jax.experimental.pallas import tpu as pltpu


# ---------------------------------------------------------------------------
# Pallas kernel: one (batch, q-tile) block of scaled dot-product attention.
# ---------------------------------------------------------------------------
def _sdpa_body(q_ref, k_ref, v_ref, m_ref, attn_ref, out_ref, inv_scale):
    # Fold 1/scale into q (TQ x Dk) instead of dividing the (TQ x Lk) score matrix.
    q = q_ref[...] * jnp.asarray(inv_scale, dtype=q_ref.dtype)   # (TQ, Dk), native dtype
    k = k_ref[...]                                               # (Lk, Dk), native dtype
    v = v_ref[...]                                               # (Lk, Dv), native dtype

    # NT matmul: contract the last dims directly; MXU accumulates in f32.
    s = lax.dot_general(
        q, k, dimension_numbers=(((1,), (1,)), ((), ())),
        preferred_element_type=jnp.float32,
    )                                                            # (TQ, Lk) f32

    if m_ref is not None:
        # int8 mask, nonzero => masked. Large finite negative avoids NaNs on
        # fully-masked rows; identical to -inf for rows with >=1 valid key.
        s = jnp.where(m_ref[...] != 0, jnp.float32(-1e30), s)

    # Numerically stable softmax along the key axis.
    s_max = jnp.max(s, axis=-1, keepdims=True)
    e = jnp.exp(s - s_max)
    denom = jnp.sum(e, axis=-1, keepdims=True)
    p = e * pl.reciprocal(denom, approx=False)                   # EUP reciprocal, exact

    attn_ref[...] = p.astype(attn_ref.dtype)
    # PV matmul with probs cast back to v's dtype (bf16-friendly), f32 accumulation.
    out_ref[...] = jnp.dot(
        p.astype(v.dtype), v, preferred_element_type=jnp.float32
    ).astype(out_ref.dtype)


def _sdpa_kernel_masked(q_ref, k_ref, v_ref, m_ref, attn_ref, out_ref, *, inv_scale):
    _sdpa_body(q_ref, k_ref, v_ref, m_ref, attn_ref, out_ref, inv_scale)


def _sdpa_kernel_nomask(q_ref, k_ref, v_ref, attn_ref, out_ref, *, inv_scale):
    _sdpa_body(q_ref, k_ref, v_ref, None, attn_ref, out_ref, inv_scale)


def _pick_q_tile(lq, max_tile=256):
    """Largest multiple-of-8 divisor of Lq that is <= max_tile (else Lq itself)."""
    if lq <= max_tile:
        return lq
    for t in range(max_tile - (max_tile % 8), 7, -8):
        if lq % t == 0:
            return t
    return lq


def scaled_dot_product_attention(q, k, v, scale, mask=None, *, max_q_tile=256):
    """Pallas implementation of ScaledDotProductAttention.forward -> (attn, output)."""
    B, Lq, Dk = q.shape
    Bk, Lk, Dk2 = k.shape
    Bv, Lkv, Dv = v.shape
    assert Dk == Dk2 and B == Bk == Bv and Lk == Lkv

    tq = _pick_q_tile(Lq, max_q_tile)
    grid = (B, Lq // tq)
    inv_scale = 1.0 / float(scale)

    # Squeezed (None) leading batch dim -> kernel sees clean 2D refs.
    q_spec = pl.BlockSpec((None, tq, Dk), lambda b, qi: (b, qi, 0))
    k_spec = pl.BlockSpec((None, Lk, Dk), lambda b, qi: (b, 0, 0))   # resident across q tiles
    v_spec = pl.BlockSpec((None, Lk, Dv), lambda b, qi: (b, 0, 0))
    out_specs = [
        pl.BlockSpec((None, tq, Lk), lambda b, qi: (b, qi, 0)),      # attn
        pl.BlockSpec((None, tq, Dv), lambda b, qi: (b, qi, 0)),      # output
    ]
    out_shapes = (
        jax.ShapeDtypeStruct((B, Lq, Lk), jnp.float32),
        jax.ShapeDtypeStruct((B, Lq, Dv), q.dtype),
    )

    compiler_params = pltpu.CompilerParams(
        dimension_semantics=("parallel", "parallel"),
        vmem_limit_bytes=32 * 1024 * 1024,
    )

    if mask is not None:
        mask_i8 = mask.astype(jnp.int8)   # 4x less DMA traffic than int32
        kernel = functools.partial(_sdpa_kernel_masked, inv_scale=inv_scale)
        in_specs = [q_spec, k_spec, v_spec,
                    pl.BlockSpec((None, tq, Lk), lambda b, qi: (b, qi, 0))]
        args = (q, k, v, mask_i8)
    else:
        kernel = functools.partial(_sdpa_kernel_nomask, inv_scale=inv_scale)
        in_specs = [q_spec, k_spec, v_spec]
        args = (q, k, v)

    attn, out = pl.pallas_call(
        kernel,
        out_shape=out_shapes,
        grid_spec=pltpu.PrefetchScalarGridSpec(
            num_scalar_prefetch=0,
            grid=grid,
            in_specs=in_specs,
            out_specs=out_specs,
        ),
        compiler_params=compiler_params,
    )(*args)
    return attn, out


# ---------------------------------------------------------------------------
# SelfAttention / MultiHeadAttention wrapper (projections are plain jnp matmuls).
# ---------------------------------------------------------------------------
def _self_attention_impl(x, params, n_head, d_k, d_v, mask, sdpa_fn):
    # SelfAttention: q/k/v = x @ w{q,k,v}
    q = x @ params["wq"]
    k = x @ params["wk"]
    v = x @ params["wv"]
    batch, n_q, _ = q.shape
    n_k = k.shape[1]

    # MultiHeadAttention input projections (Linear: y = x @ W + b, W stored (in, out)).
    qp = q @ params["fc_q_w"] + params["fc_q_b"]
    kp = k @ params["fc_k_w"] + params["fc_k_b"]
    vp = v @ params["fc_v_w"] + params["fc_v_b"]

    def split_heads(t, d):
        b, n, _ = t.shape
        # (b, n, h*d) -> (b, n, h, d) -> (h, b, n, d) -> (h*b, n, d)
        return t.reshape(b, n, n_head, d).transpose(2, 0, 1, 3).reshape(n_head * b, n, d)

    qh = split_heads(qp, d_k)
    kh = split_heads(kp, d_k)
    vh = split_heads(vp, d_v)

    m = None if mask is None else jnp.tile(mask, (n_head, 1, 1))
    scale = float(np.power(d_k, 0.5))

    attn, oh = sdpa_fn(qh, kh, vh, scale, m)

    # (h*b, n_q, d_v) -> (h, b, n_q, d_v) -> (b, n_q, h, d_v) -> (b, n_q, h*d_v)
    out = oh.reshape(n_head, batch, n_q, d_v).transpose(1, 2, 0, 3)
    out = out.reshape(batch, n_q, n_head * d_v)
    out = out @ params["fc_o_w"] + params["fc_o_b"]
    return attn, out


def self_attention(x, params, n_head, d_k, d_v, mask=None):
    """Pallas-backed SelfAttention.forward -> (attn, output)."""
    return _self_attention_impl(x, params, n_head, d_k, d_v, mask,
                                scaled_dot_product_attention)


# Pure-JAX reference that mirrors the PyTorch forward exactly.
def _sdpa_reference(q, k, v, scale, mask=None):
    u = jnp.einsum("bqd,bkd->bqk", q, k) / scale
    if mask is not None:
        u = jnp.where(mask, -jnp.inf, u)
    attn = jax.nn.softmax(u, axis=-1)
    out = jnp.einsum("bqk,bkd->bqd", attn, v)
    return attn, out


def self_attention_reference(x, params, n_head, d_k, d_v, mask=None):
    return _self_attention_impl(x, params, n_head, d_k, d_v, mask, _sdpa_reference)


# ---------------------------------------------------------------------------
# Parameter init (uniform(-stdv, stdv), stdv = 1/sqrt(fan_in)) — forward-only demo.
# ---------------------------------------------------------------------------
def init_params(key, n_head, d_k, d_v, d_x, d_o, dtype=jnp.float32):
    keys = jax.random.split(key, 11)

    def u(k, shape, fan):
        stdv = 1.0 / np.sqrt(fan)
        return jax.random.uniform(k, shape, dtype, minval=-stdv, maxval=stdv)

    return {
        "wq": u(keys[0], (d_x, d_k), d_k),
        "wk": u(keys[1], (d_x, d_k), d_k),
        "wv": u(keys[2], (d_x, d_v), d_v),
        "fc_q_w": u(keys[3], (d_k, n_head * d_k), d_k),
        "fc_q_b": u(keys[4], (n_head * d_k,), d_k),
        "fc_k_w": u(keys[5], (d_k, n_head * d_k), d_k),
        "fc_k_b": u(keys[6], (n_head * d_k,), d_k),
        "fc_v_w": u(keys[7], (d_v, n_head * d_v), d_v),
        "fc_v_b": u(keys[8], (n_head * d_v,), d_v),
        "fc_o_w": u(keys[9], (n_head * d_v, d_o), n_head * d_v),
        "fc_o_b": u(keys[10], (d_o,), n_head * d_v),
    }


if __name__ == "__main__":
    # Small shapes implied by the module: batch=2, seq=8, d_x=32, 2 heads of d_k=d_v=64.
    batch, seq, d_x = 2, 8, 32
    n_head, d_k, d_v, d_o = 2, 64, 64, 32

    key = jax.random.PRNGKey(0)
    kp, kx, km = jax.random.split(key, 3)

    params = init_params(kp, n_head, d_k, d_v, d_x, d_o)
    x = jax.random.normal(kx, (batch, seq, d_x), dtype=jnp.float32)

    # Boolean mask (True = masked); keep >=1 unmasked key per query so softmax is finite.
    mask = jax.random.bernoulli(km, p=0.3, shape=(batch, seq, seq))
    mask = mask.at[:, :, 0].set(False)

    attn, out = self_attention(x, params, n_head=n_head, d_k=d_k, d_v=d_v, mask=mask)
    jax.block_until_ready((attn, out))

    attn_ref, out_ref = self_attention_reference(
        x, params, n_head=n_head, d_k=d_k, d_v=d_v, mask=mask)

    assert attn.shape == (n_head * batch, seq, seq)
    assert out.shape == (batch, seq, d_o)
    assert np.allclose(np.asarray(attn), np.asarray(attn_ref), atol=1e-3, rtol=1e-3)
    assert np.allclose(np.asarray(out), np.asarray(out_ref), atol=1e-3, rtol=1e-3)

    # Also exercise the mask-free fast path.
    attn_nm, out_nm = self_attention(x, params, n_head=n_head, d_k=d_k, d_v=d_v, mask=None)
    jax.block_until_ready((attn_nm, out_nm))
    attn_nm_ref, out_nm_ref = self_attention_reference(
        x, params, n_head=n_head, d_k=d_k, d_v=d_v, mask=None)
    assert np.allclose(np.asarray(attn_nm), np.asarray(attn_nm_ref), atol=1e-3, rtol=1e-3)
    assert np.allclose(np.asarray(out_nm), np.asarray(out_nm_ref), atol=1e-3, rtol=1e-3)

    print("KERNEL_OK")
</pallas_src>

<mosaic_0001>
module attributes {stable_mosaic.version = 11 : i64} {
  func.func @_sdpa_kernel_masked(%arg0: i32, %arg1: i32, %arg2: memref<1x8x64xf32, #tpu.memory_space<vmem>>, %arg3: memref<1x8x64xf32, #tpu.memory_space<vmem>>, %arg4: memref<1x8x64xf32, #tpu.memory_space<vmem>>, %arg5: memref<1x8x8xi8, #tpu.memory_space<vmem>>, %arg6: memref<1x8x8xf32, #tpu.memory_space<vmem>>, %arg7: memref<1x8x64xf32, #tpu.memory_space<vmem>>) attributes {dimension_semantics = [#tpu.dimension_semantics<parallel>, #tpu.dimension_semantics<parallel>], iteration_bounds = array<i64: 4, 1>, scalar_prefetch = 0 : i64, scratch_operands = 0 : i64, tpu.core_type = #tpu.core_type<tc>, window_params = [{transform_indices = @transform_0, window_bounds = array<i64: 1, 8, 64>}, {transform_indices = @transform_1, window_bounds = array<i64: 1, 8, 64>}, {transform_indices = @transform_2, window_bounds = array<i64: 1, 8, 64>}, {transform_indices = @transform_3, window_bounds = array<i64: 1, 8, 8>}, {transform_indices = @transform_4, window_bounds = array<i64: 1, 8, 8>}, {transform_indices = @transform_5, window_bounds = array<i64: 1, 8, 64>}]} {
    %c0 = arith.constant 0 : index
    %c0_0 = arith.constant 0 : index
    %c0_1 = arith.constant 0 : index
    %0 = vector.load %arg2[%c0, %c0_0, %c0_1] : memref<1x8x64xf32, #tpu.memory_space<vmem>>, vector<1x8x64xf32>
    %1 = vector.shape_cast %0 : vector<1x8x64xf32> to vector<8x64xf32>
    %cst = arith.constant 1.250000e-01 : f32
    %2 = vector.broadcast %cst : f32 to vector<8x64xf32>
    %3 = arith.mulf %1, %2 : vector<8x64xf32>
    %c0_2 = arith.constant 0 : index
    %c0_3 = arith.constant 0 : index
    %c0_4 = arith.constant 0 : index
    %4 = vector.load %arg3[%c0_2, %c0_3, %c0_4] : memref<1x8x64xf32, #tpu.memory_space<vmem>>, vector<1x8x64xf32>
    %5 = vector.shape_cast %4 : vector<1x8x64xf32> to vector<8x64xf32>
    %c0_5 = arith.constant 0 : index
    %c0_6 = arith.constant 0 : index
    %c0_7 = arith.constant 0 : index
    %6 = vector.load %arg4[%c0_5, %c0_6, %c0_7] : memref<1x8x64xf32, #tpu.memory_space<vmem>>, vector<1x8x64xf32>
    %7 = vector.shape_cast %6 : vector<1x8x64xf32> to vector<8x64xf32>
    %cst_8 = arith.constant dense<0.000000e+00> : vector<8x8xf32>
    %8 = tpu.matmul %3, %5, %cst_8 {dimension_numbers = #tpu.dot_dimension_numbers<[1], [1], [0], [0], [0, 0, 1, 0], [], []>} : vector<8x64xf32>, vector<8x64xf32>, vector<8x8xf32> -> vector<8x8xf32>
    %c0_9 = arith.constant 0 : index
    %c0_10 = arith.constant 0 : index
    %c0_11 = arith.constant 0 : index
    %9 = vector.load %arg5[%c0_9, %c0_10, %c0_11] : memref<1x8x8xi8, #tpu.memory_space<vmem>>, vector<1x8x8xi8>
    %10 = vector.shape_cast %9 : vector<1x8x8xi8> to vector<8x8xi8>
    %c0_i8 = arith.constant 0 : i8
    %11 = vector.broadcast %c0_i8 : i8 to vector<8x8xi8>
    %12 = arith.cmpi ne, %10, %11 : vector<8x8xi8>
    %cst_12 = arith.constant -1.000000e+30 : f32
    %13 = vector.broadcast %cst_12 : f32 to vector<8x8xf32>
    %14 = arith.select %12, %13, %8 : vector<8x8xi1>, vector<8x8xf32>
    %cst_13 = arith.constant dense<0xFF800000> : vector<8xf32>
    %15 = vector.multi_reduction <maximumf>, %14, %cst_13 [1] : vector<8x8xf32> to vector<8xf32>
    %16 = vector.shape_cast %15 : vector<8xf32> to vector<8x1xf32>
    %17 = vector.broadcast %16 : vector<8x1xf32> to vector<8x8xf32>
    %18 = arith.subf %14, %17 : vector<8x8xf32>
    %19 = math.exp %18 : vector<8x8xf32>
    %cst_14 = arith.constant dense<0.000000e+00> : vector<8xf32>
    %20 = vector.multi_reduction <add>, %19, %cst_14 [1] : vector<8x8xf32> to vector<8xf32>
    %21 = vector.shape_cast %20 : vector<8xf32> to vector<8x1xf32>
    %22 = tpu.reciprocal %21 : vector<8x1xf32> -> vector<8x1xf32>
    %23 = vector.broadcast %22 : vector<8x1xf32> to vector<8x8xf32>
    %24 = arith.mulf %19, %23 : vector<8x8xf32>
    %c0_15 = arith.constant 0 : index
    %c0_16 = arith.constant 0 : index
    %c0_17 = arith.constant 0 : index
    %25 = vector.load %arg6[%c0_15, %c0_16, %c0_17] : memref<1x8x8xf32, #tpu.memory_space<vmem>>, vector<1x8x8xf32>
    %26 = vector.shape_cast %25 : vector<1x8x8xf32> to vector<8x8xf32>
    %27 = vector.shape_cast %24 : vector<8x8xf32> to vector<1x8x8xf32>
    tpu.vector_store %arg6[%c0_15, %c0_16, %c0_17], %27 {strides = array<i32>} : memref<1x8x8xf32, #tpu.memory_space<vmem>>, vector<1x8x8xf32>,
    %cst_18 = arith.constant dense<0.000000e+00> : vector<8x64xf32>
    %28 = tpu.matmul %24, %7, %cst_18 {dimension_numbers = #tpu.dot_dimension_numbers<[1], [0], [0], [1], [0, 0, 1, 1], [], []>} : vector<8x8xf32>, vector<8x64xf32>, vector<8x64xf32> -> vector<8x64xf32>
    %c0_19 = arith.constant 0 : index
    %c0_20 = arith.constant 0 : index
    %c0_21 = arith.constant 0 : index
    %29 = vector.load %arg7[%c0_19, %c0_20, %c0_21] : memref<1x8x64xf32, #tpu.memory_space<vmem>>, vector<1x8x64xf32>
    %30 = vector.shape_cast %29 : vector<1x8x64xf32> to vector<8x64xf32>
    %31 = vector.shape_cast %28 : vector<8x64xf32> to vector<1x8x64xf32>
    tpu.vector_store %arg7[%c0_19, %c0_20, %c0_21], %31 {strides = array<i32>} : memref<1x8x64xf32, #tpu.memory_space<vmem>>, vector<1x8x64xf32>,
    return
  }
  func.func @transform_0(%arg0: i32, %arg1: i32) -> (i32, i32, i32) {
    %c0_i32 = arith.constant 0 : i32
    %c0_i32_0 = arith.constant 0 : i32
    return %arg0, %arg1, %c0_i32 : i32, i32, i32
  }
  func.func @transform_1(%arg0: i32, %arg1: i32) -> (i32, i32, i32) {
    %c0_i32 = arith.constant 0 : i32
    %c0_i32_0 = arith.constant 0 : i32
    %c0_i32_1 = arith.constant 0 : i32
    return %arg0, %c0_i32, %c0_i32_0 : i32, i32, i32
  }
  func.func @transform_2(%arg0: i32, %arg1: i32) -> (i32, i32, i32) {
    %c0_i32 = arith.constant 0 : i32
    %c0_i32_0 = arith.constant 0 : i32
    %c0_i32_1 = arith.constant 0 : i32
    return %arg0, %c0_i32, %c0_i32_0 : i32, i32, i32
  }
  func.func @transform_3(%arg0: i32, %arg1: i32) -> (i32, i32, i32) {
    %c0_i32 = arith.constant 0 : i32
    %c0_i32_0 = arith.constant 0 : i32
    return %arg0, %arg1, %c0_i32 : i32, i32, i32
  }
  func.func @transform_4(%arg0: i32, %arg1: i32) -> (i32, i32, i32) {
    %c0_i32 = arith.constant 0 : i32
    %c0_i32_0 = arith.constant 0 : i32
    return %arg0, %arg1, %c0_i32 : i32, i32, i32
  }
  func.func @transform_5(%arg0: i32, %arg1: i32) -> (i32, i32, i32) {
    %c0_i32 = arith.constant 0 : i32
    %c0_i32_0 = arith.constant 0 : i32
    return %arg0, %arg1, %c0_i32 : i32, i32, i32
  }
}

</mosaic_0001>

<bundles_post_ra>
// kernel: tpu_custom_call.1
= control target key start
LH: loop header
LB: loop body
LE: loop exit
PB: predicated region body
PF: predicated region fallthrough
CT: control target
= control target key end

     0   :  { %s1424_s0 = inlined_call_operand.hbm [shape: f32[4,8,64], index: 0, kind: input, shape index: {}]   ;;  %s1425_s1 = inlined_call_operand.hbm [shape: f32[4,8,64], index: 1, kind: input, shape index: {}]   ;;  %s1426_s2 = inlined_call_operand.hbm [shape: f32[4,8,64], index: 2, kind: input, shape index: {}]   ;;  %s1427_s3 = inlined_call_operand.vmem [shape: s8[4,8,8], index: 3, kind: input, shape index: {}]   ;;  %s1428_s4 = inlined_call_operand.hbm [shape: f32[4,8,8], index: 4, kind: output, shape index: {0}]   ;;  %s1429_s5 = inlined_call_operand.hbm [shape: f32[4,8,64], index: 5, kind: output, shape index: {1}]  }
   0x1   :  { %1438 = sst [smem:[#allocation20_spill]] %s1425_s1 }
   0x2   :  { %11 = vsyncpa [#allocation3], 0 }
   0x3   :  { %13 = vsyncpa [#allocation3 + $0x1], 0 }
   0x4   :  { %14 = vsyncpa [#allocation6], 0 }
   0x5   :  { %16 = vsyncpa [#allocation6 + $0x1], 0 }
   0x6   :  { %17 = vsyncpa [#allocation4], 0 }
   0x7   :  { %19 = vsyncpa [#allocation4 + $0x1], 0 }
   0x8   :  { %20 = vsyncpa [#allocation10], 0 }
   0x9   :  { %22 = vsyncpa [#allocation10 + $0x1], 0  ;;  %s1122_s18 = smov 0   ;;  %s1124_s19 = smov 0  }
   0xa   :  { %s1126_s20 = smov 0   ;;  %s1128_s21 = smov 0  }
   0xb   :  { %s1130_s22 = smov 0   ;;  %s1132_s23 = smov 0  }
   0xc LB: > { %1439 = sst [smem:[#allocation15_spill]] %s1062_s18  ;;  %s1153_s24 = sadd.s32 4294967295, %s1082_s23   ;;  %s1082_s23 = sphi %s1132_s23, %s28_s23   ;;  %s1078_s22 = sphi %s1130_s22, %s1464_s22   ;;  %s1074_s21 = sphi %s1128_s21, %s1463_s21   ;;  %s1070_s20 = sphi %s1126_s20, %s1467_s20   ;;  %s1066_s19 = sphi %s1124_s19, %s1466_s19   ;;  %s1062_s18 = sphi %s1122_s18, %s1465_s18  }
   0xd   : > { %1440 = sst [smem:[#allocation16_spill]] %s1078_s22  ;;  %s751_s25 = sadd.s32 4294967294, %s1082_s23  }
   0xe   : > { %s40_s26 = sadd.s32 1, %s1078_s22  ;;  %s49_s27 = sadd.s32 1, %s1070_s20 }
   0xf   : > { %p42_p0 = scmp.ge.s32.totalorder %s40_s26, 4  ;;  %p56_p1 = scmp.ne.s32.totalorder %s1070_s20, %s1066_s19 }
  0x10   : > { %p57_p2 = scmp.eq.s32.totalorder %s1082_s23, 0  ;;  %p62_p3 = scmp.ne.s32.totalorder %s1066_s19, %s1062_s18 }
  0x11   : > { %s1469_s26 = smov (%p42_p0, %s40_s26), 0  ;;  %p63_p5 = scmp.eq.s32.totalorder %s1153_s24, 0 }
  0x12   : > { %1441 = sst [smem:[#allocation17_spill]] %s1469_s26  ;;  %p1165_p4 = por %p57_p2, %p56_p1 }
  0x13   : > { %s44_s29 = ssub.s32 %s1078_s22, %s1469_s26  ;;  %p168_p6 = scmp.eq.s32.totalorder %s1153_s24, 3 }
  0x14   : > { %p47_p7 = scmp.eq.s32.totalorder %s44_s29, 0  ;;  %p1173_p8 = por %p63_p5, %p62_p3 }
  0x15   : > { %p1177_p9 = por %p168_p6, %p56_p1  ;;  %p174_p10 = scmp.eq.s32.totalorder %s751_s25, 3 }
  0x16   : > { %s1443_s30 = scalar_select %p1173_p8, 1, 0 }
  0x17   : > { %s1444_s6 = scalar_select %p1177_p9, 1, 0 }
  0x18   : > { %s1182_s7 = scalar_select %p47_p7, %s1070_s20, %s49_s27  }
  0x19   : > { %p1184_p11 = por %p174_p10, %p62_p3  ;;  %p817_p12 = scmp.lt.s32.totalorder %s1082_s23, 4 }
  0x1a   : > { %1445 = sst [smem:[#allocation18_spill]] %s1182_s7  ;;  %s1430_s9 = sand.u32 1, %s1070_s20  }
  0x1b   : > { %s1446_s8 = scalar_select %p1184_p11, 1, 0 }
  0x1c   : > { %s1192_s10 = sshll.u32 %s1430_s9, 3  ;;  %s1195_s11 = sshll.u32 %s1078_s22, 7 }
  0x1d   : > { %1447 = sst [smem:[#allocation19_spill]] %s1446_s8  ;;  %p1199_p13 = pnand %p817_p12, %p1165_p4 }
  0x1e   : > { %s241_s13 = sand.u32 1, %s1082_s23   ;;  %s1449_s1 = sld [smem:[#allocation20_spill]] }
  0x1f   : > { %s1448_s12 = scalar_select %p1199_p13, 1, 0 }
  0x20   : > { %s245_s17 = scalar_lea.vmem [#allocation5], %s1192_s10  ;;  %s1215_s27 = scalar_lea.sflag [#allocation6], %s241_s13 }
  0x21   : > { %s252_s25 = sshll.u32 %s245_s17, 4  ;;  %p1221_p3 = pneg %p1199_p13  ;;  %s1212_s25 = int_to_ptr.vmem [resolvable:$true] %s252_s25 }
  0x24   : > { %s1208_s16 = scalar_lea.hbm %s1449_s1, %s1195_s11  ;;  %s879_s17 = scalar_lea.hbm %s1449_s1, 512 }
  0x25   : > { %s874_s28 = scalar_lea.hbm %s1208_s16, 128  ;;  %p880_p6 = scmp.lt.u32.totalorder %s1208_s16, %s1449_s1 }
  0x26   : > { %p875_p2 = scmp.ne.s32.totalorder %s1208_s16, %s874_s28  ;;  %p881_p7 = scmp.lt.u32.totalorder %s879_s17, %s874_s28 }
  0x27   : > { %p883_p12 = scmp.lt.u32.totalorder %s874_s28, %s1208_s16 }
  0x28   : > { %p877_p4 = pnand %p1221_p3, %p875_p2  ;;  %p882_p10 = por %p881_p7, %p880_p6 }
  0x2a   : > { %p878_p5 = pneg %p877_p4  ;;  %p884_p0 = por %p883_p12, %p882_p10 }
  0x2c   : > { %p885_p1 = pnand %p884_p0, %p878_p5 }
  0x2e   : > { %888 = shalt.err (!%p885_p1)
}
  0x2f   : > { %s889_s13 = scalar_lea.vmem %s1212_s25, 128  ;;  %s1084_s14 = smov [#allocation5]  }
  0x30   : > { %p890_p2 = scmp.ne.s32.totalorder %s1212_s25, %s889_s13  ;;  %s894_s15 = sshll.u32 %s1084_s14, 4  ;;  %s895_s15 = int_to_ptr.vmem [resolvable:$false] %s894_s15 }
  0x31   : > { %s896_s26 = scalar_lea.vmem %s895_s15, 256  ;;  %p897_p9 = scmp.lt.s32.totalorder %s1212_s25, %s895_s15 }
  0x32   : > { %p892_p4 = pnand %p890_p2, %p1221_p3  ;;  %p898_p8 = scmp.lt.s32.totalorder %s896_s26, %s889_s13 }
  0x34   : > { %p893_p11 = pneg %p892_p4  ;;  %p899_p6 = por %p898_p8, %p897_p9 }
  0x36   : > { %p900_p7 = pnand %p899_p6, %p893_p11 }
  0x38   : > { %903 = shalt.err (!%p900_p7)
}
  0x39   : > { %806 = dma.hbm_to_vmem [thread:$0]  (!%p1199_p13), %s1208_s16, 128, %s1212_s25, %s1215_s27  }
  0x3a   : > { %p1451_p0 = scmp.lt.s32.totalorder %s1082_s23, 5  ;;  %p1452_p1 = scmp.ge.s32.totalorder %s1082_s23, 1 }
  0x3b   : > { %s1257_s13 = scalar_lea.hbm %s1424_s0, %s1195_s11  ;;  %s226_s14 = scalar_lea.vmem [#allocation2], %s1192_s10 }
  0x3c   : > { %p1249_p5 = pnand %p1452_p1, %p1451_p0  ;;  %s234_s15 = sshll.u32 %s226_s14, 4  ;;  %s1260_s15 = int_to_ptr.vmem [resolvable:$true] %s234_s15 }
  0x3d   : > { %s1266_s26 = scalar_lea.hbm %s1426_s2, %s1195_s11  ;;  %s1454_s1 = sand.u32 1, %s1070_s20  }
  0x3e   : > { %s1453_s9 = scalar_select %p1249_p5, 1, 0 }
  0x3f   : > { %s223_s22 = scalar_lea.sflag [#allocation3], %s1454_s1  ;;  %s904_s7 = scalar_lea.hbm %s1257_s13, 128 }
  0x40   : > { %p905_p8 = scmp.ne.s32.totalorder %s1257_s13, %s904_s7  ;;  %s909_s8 = scalar_lea.hbm %s1424_s0, 512 }
  0x41   : > { %p910_p10 = scmp.lt.u32.totalorder %s1257_s13, %s1424_s0  ;;  %p911_p12 = scmp.lt.u32.totalorder %s909_s8, %s904_s7 }
  0x42   : > { %p907_p9 = pnand %p905_p8, %p1221_p3  ;;  %p913_p4 = scmp.lt.u32.totalorder %s904_s7, %s1257_s13 }
  0x43   : > { %p912_p2 = por %p911_p12, %p910_p10 }
  0x44   : > { %p908_p11 = pneg %p907_p9 }
  0x45   : > { %p914_p6 = por %p913_p4, %p912_p2 }
  0x47   : > { %p915_p7 = pnand %p914_p6, %p908_p11 }
  0x49   : > { %918 = shalt.err (!%p915_p7)
}
  0x4a   : > { %s919_s1 = scalar_lea.vmem %s1260_s15, 128  ;;  %s1085_s11 = smov [#allocation2]  }
  0x4b   : > { %p920_p0 = scmp.ne.s32.totalorder %s1260_s15, %s919_s1  ;;  %s924_s16 = sshll.u32 %s1085_s11, 4  ;;  %s925_s16 = int_to_ptr.vmem [resolvable:$false] %s924_s16 }
  0x4c   : > { %s926_s18 = scalar_lea.vmem %s925_s16, 256  ;;  %p927_p9 = scmp.lt.s32.totalorder %s1260_s15, %s925_s16 }
  0x4d   : > { %p922_p1 = pnand %p920_p0, %p1221_p3  ;;  %p928_p5 = scmp.lt.s32.totalorder %s926_s18, %s919_s1 }
  0x4f   : > { %p923_p8 = pneg %p922_p1  ;;  %p929_p10 = por %p928_p5, %p927_p9 }
  0x51   : > { %p930_p12 = pnand %p929_p10, %p923_p8 }
  0x53   : > { %933 = shalt.err (!%p930_p12)
}
  0x54   : > { %803 = dma.hbm_to_vmem [thread:$0]  (!%p1199_p13), %s1257_s13, 128, %s1260_s15, %s223_s22  }
  0x55   : > { %s263_s7 = scalar_lea.vmem [#allocation7], %s1192_s10  ;;  %s934_s25 = scalar_lea.hbm %s1266_s26, 128 }
  0x56   : > { %s270_s8 = sshll.u32 %s263_s7, 4  ;;  %p935_p11 = scmp.ne.s32.totalorder %s1266_s26, %s934_s25  ;;  %s271_s8 = int_to_ptr.vmem [resolvable:$true] %s270_s8 }
  0x57   : > { %s939_s14 = scalar_lea.hbm %s1426_s2, 512  ;;  %p940_p4 = scmp.lt.u32.totalorder %s1266_s26, %s1426_s2 }
  0x58   : > { %p937_p5 = pnand %p935_p11, %p1221_p3  ;;  %p941_p6 = scmp.lt.u32.totalorder %s939_s14, %s934_s25 }
  0x59   : > { %p943_p0 = scmp.lt.u32.totalorder %s934_s25, %s1266_s26 }
  0x5a   : > { %p938_p2 = pneg %p937_p5  ;;  %p942_p7 = por %p941_p6, %p940_p4 }
  0x5c   : > { %p944_p1 = por %p943_p0, %p942_p7 }
  0x5e   : > { %p945_p8 = pnand %p944_p1, %p938_p2 }
  0x60   : > { %948 = shalt.err (!%p945_p8)
}
  0x61   : > { %s949_s22 = scalar_lea.vmem %s271_s8, 128  ;;  %s1086_s10 = smov [#allocation7]  }
  0x62   : > { %p950_p9 = scmp.ne.s32.totalorder %s271_s8, %s949_s22  ;;  %s954_s13 = sshll.u32 %s1086_s10, 4  ;;  %s955_s13 = int_to_ptr.vmem [resolvable:$false] %s954_s13 }
  0x63   : > { %s956_s15 = scalar_lea.vmem %s955_s13, 256  ;;  %p957_p11 = scmp.lt.s32.totalorder %s271_s8, %s955_s13 }
  0x64   : > { %p952_p10 = pnand %p950_p9, %p1221_p3  ;;  %p958_p5 = scmp.lt.s32.totalorder %s956_s15, %s949_s22 }
  0x66   : > { %p953_p12 = pneg %p952_p10  ;;  %p959_p13 = por %p958_p5, %p957_p11 }
  0x68   : > { %p960_p4 = pnand %p959_p13, %p953_p12 }
  0x6a   : > { %963 = shalt.err (!%p960_p4)
}
  0x6b   : > { %p1455_p6 = scmp.ne.s32.totalorder %s1448_s12, 0  ;;  %p1456_p2 = scmp.ne.s32.totalorder %s1453_s9, 0 }
  0x6c   : > { %s1313_s29 = sand.u32 (!%p1456_p2), 1, %s1066_s19   ;;  %p1457_p13 = scmp.ne.s32.totalorder (!%p1456_p2), %s1443_s30, 0 }
  0x6d   : > { %809 = dma.hbm_to_vmem [thread:$0]  (!%p1455_p6), %s1266_s26, 128, %s271_s8, %s1215_s27  }
  0x6e   : > { %289 = sbr.rel (%p1456_p2) target bundleno = 880 (0x370), region = 36  ;;  %s1316_s16 = sshll.u32 (!%p1456_p2), %s1313_s29, 3 }
  0x6f   : > { %s292_s18 = scalar_lea.sflag (!%p1456_p2), [#allocation3], %s1313_s29  ;;  %s295_s7 = scalar_lea.vmem (!%p1456_p2), [#allocation2], %s1316_s16 }
  0x75   : > { %1045 = dma.done.wait (%p1457_p13), %s292_s18, 128  }
  0x76   : > { %1047 = vsyncadd (%p1457_p13), %s292_s18, 4294967168  ;;  %s300_s12 = sand.u32 1, %s1153_s24   ;;  %s304_s9 = scalar_lea.vmem [#allocation5], %s1316_s16 }
  0x77   : > { %s301_s27 = scalar_lea.sflag [#allocation6], %s300_s12 }
  0x78   : > { %1049 = dma.done.wait (%p1457_p13), %s301_s27, 256  }
  0x79   : > { %1051 = vsyncadd (%p1457_p13), %s301_s27, 4294967040  ;;  %v1087_v0 = vmov 0.0   ;;  %vm1088_vm0 = vmmov 0   ;;  %vm375_vm1 = vcmask 523264   ;;  %v373_v1 = vld [vmem:[%s304_s9] sm:$0xff]  ;;  %v371_v2 = vld [vmem:[%s295_s7] sm:$0xff] }
  0x7a   : > { %780 = vmatprep.subr.mxu0 %v1087_v0  ;;  %782 = vmatprep.mubr.msk.f32.mxu0 %vm1088_vm0, %v1087_v0  ;;  %v372_v3 = vmul.f32 0.125, %v371_v2  ;;  %p362_p3 = scmp.lt.s32.totalorder %s1074_s21, 3  ;;  %v1089_v5 = vmov 0   ;;  %vm458_vm4 = vcmask 64512   ;;  %s313_s28 = scalar_lea.vmem [#allocation7], %s1316_s16 }
  0x7b   : > { %785 = vmatprep.subr.mxu1 %v1087_v0  ;;  %787 = vmatprep.mubr.msk.f32.mxu1 %vm1088_vm0, %v1087_v0  ;;  %v374_v17 = vld [vmem:[%s313_s28] sm:$0xff]  ;;  %s354_s17 = scalar_lea.vmem [#allocation8], %s1316_s16  ;;  %s772_s14 = sshll.u32 %s1074_s21, 7 }
  0x7c   : > { %781 = vmatpush3.xpose.msk.msra.mxu0 %vm375_vm1, %v373_v1  ;;  %s363_s24 = scalar_select %p362_p3, %s1074_s21, 3  ;;  %786 = vmatpush3.msra.mxu1 %v374_v17 }
  0x7d   : > { %s565_s1 = sshll.u32 %s354_s17, 4  ;;  %s1349_s10 = scalar_lea.hbm %s1428_s4, %s772_s14  ;;  %s566_s1 = int_to_ptr.vmem [resolvable:$true] %s565_s1 }
  0x7e   : > { %s766_s30 = sshll.u32 %s363_s24, 1  ;;  %s546_s13 = scalar_lea.sflag [#allocation4], %s1313_s29 }
  0x7f   : > { %783 = vmatmul.mubr.msk.f32.vlgmr.msra.gmra.mrb[0].mxu0 %vm375_vm1, %v372_v3  ;;  %s368_s25 = scalar_lea.vmem %s1427_s3, %s766_s30  ;;  %s964_s15 = scalar_lea.vmem %s566_s1, 128 }
  0x80   : > { %v452_v4 = vld [vmem:[%s368_s25] sm:$0x3]  ;;  %p965_p7 = scmp.ne.s32.totalorder %s566_s1, %s964_s15  ;;  %p1458_p0 = scmp.ne.s32.totalorder %s1444_s6, 0 }
  0x81   : > { %vm453_vm2 = vnez %v452_v4  ;;  %s1090_s18 = smov [#allocation8]  }
  0x82   : > { %v454_v6 = vsel %vm453_vm2, 16843009, %v1089_v5  ;;  %p966_p1 = pnand %p965_p7, %p1458_p0  ;;  %s968_s7 = sshll.u32 %s1090_s18, 4  ;;  %s969_s7 = int_to_ptr.vmem [resolvable:$false] %s968_s7 }
  0x83   : > { %v455_v7 = vunpack.c.0.s8 %v454_v6  ;;  %s970_s12 = scalar_lea.vmem %s969_s7, 256  ;;  %p971_p9 = scmp.lt.s32.totalorder %s566_s1, %s969_s7 }
  0x84   : > { %p967_p8 = pneg %p966_p1  ;;  %p972_p10 = scmp.lt.s32.totalorder %s970_s12, %s964_s15 }
  0x85   : > { %vm456_vm3 = vcmp.ne.s32.totalorder %v455_v7, 0 }
  0x86   : > { %p973_p12 = por %p972_p10, %p971_p9 }
  0x88   : > { %p974_p11 = pnand %p973_p12, %p967_p8 }
 0x152   : > { %v448_v8 = vpop.f32.mrb[0].mxu0 }
 0x153   : > { %v457_v9 = vsel %vm456_vm3, -1e+30, %v448_v8  ;;  %v784_v10 = vpop.f32.mrb[1].mxu0 }
 0x154   : > { %v459_v11 = vsel %vm458_vm4, %v457_v9, -inf }
 0x155   : > { %460 = vmax.xlane.f32.xlu0 %v459_v11 }
 0x1e2   : > { %v461_v12 = vpop.xlane.xlu0 %460 }
 0x1e3   : > { %v462_v13 = vsub.f32 %v457_v9, %v461_v12 }
 0x1e5   : > { %v463_v14 = vmul.f32 1.442695, %v462_v13 }
 0x1e7   : > { %870 = vpow2.f32 %v463_v14 }
 0x1f1   : > { %v871_v15 = vpop.eup %870 }
 0x1f2   : > { %v465_v16 = vsel %vm458_vm4, %v871_v15, 0.0 }
 0x1f3   : > { %466 = vadd.xlane.f32.xlu0 %v465_v16 }
 0x280   : > { %v467_v18 = vpop.xlane.xlu0 %466 }
 0x281   : > { %872 = vrcp.f32 %v467_v18 }
 0x28b   : > { %v873_v19 = vpop.eup %872 }
 0x28c   : > { %v469_v20 = vmul.f32 %v873_v19, %v871_v15 }
 0x28e   : > { %788 = vmatmul.mubr.msk.f32.vlgmr.msra.gmra.mrb[0].mxu1 %vm458_vm4, %v469_v20  ;;  %470 = vst.msk [vmem:[%s354_s17] sm:$0xff] %vm458_vm4, %v469_v20 }
 0x28f   : > { %977 = shalt.err (!%p974_p11)
}
 0x290   : > { %s978_s27 = scalar_lea.hbm %s1349_s10, 128  ;;  %s982_s30 = scalar_lea.hbm %s1428_s4, 512 }
 0x291   : > { %p979_p5 = scmp.ne.s32.totalorder %s1349_s10, %s978_s27  ;;  %p983_p2 = scmp.lt.u32.totalorder %s1349_s10, %s1428_s4 }
 0x292   : > { %p984_p13 = scmp.lt.u32.totalorder %s982_s30, %s978_s27  ;;  %p986_p7 = scmp.lt.u32.totalorder %s978_s27, %s1349_s10 }
 0x293   : > { %p980_p4 = pnand %p979_p5, %p1458_p0 }
 0x294   : > { %p985_p3 = por %p984_p13, %p983_p2 }
 0x295   : > { %p981_p6 = pneg %p980_p4 }
 0x296   : > { %p987_p1 = por %p986_p7, %p985_p3 }
 0x298   : > { %p988_p8 = pnand %p987_p1, %p981_p6 }
 0x29a   : > { %991 = shalt.err (!%p988_p8)
}
 0x29b   : > { %796 = dma.vmem_to_hbm [thread:$0]  (%p1458_p0), %s566_s1, 128, %s1349_s10, %s546_s13  }
 0x29c   : > { %s361_s25 = scalar_lea.vmem [#allocation9], %s1316_s16  ;;  %s1375_s22 = scalar_lea.hbm %s1429_s5, %s772_s14 }
 0x29d   : > { %s579_s28 = sshll.u32 %s361_s25, 4  ;;  %s551_s15 = scalar_lea.sflag [#allocation10], %s1313_s29  ;;  %s1377_s28 = int_to_ptr.vmem [resolvable:$true] %s579_s28 }
 0x29e   : > { %s992_s18 = scalar_lea.vmem %s1377_s28, 128  ;;  %s1091_s21 = smov [#allocation9]  }
 0x29f   : > { %p993_p9 = scmp.ne.s32.totalorder %s1377_s28, %s992_s18  ;;  %s996_s16 = sshll.u32 %s1091_s21, 4  ;;  %s997_s16 = int_to_ptr.vmem [resolvable:$false] %s996_s16 }
 0x2a0   : > { %s998_s14 = scalar_lea.vmem %s997_s16, 256  ;;  %p999_p11 = scmp.lt.s32.totalorder %s1377_s28, %s997_s16 }
 0x2a1   : > { %p994_p10 = pnand %p993_p9, %p1458_p0  ;;  %p1000_p5 = scmp.lt.s32.totalorder %s998_s14, %s992_s18 }
 0x2a3   : > { %p995_p12 = pneg %p994_p10  ;;  %p1001_p4 = por %p1000_p5, %p999_p11 }
 0x2a5   : > { %p1002_p6 = pnand %p1001_p4, %p995_p12 }
 0x361   : > { %v540_v21 = vpop.f32.mrb[0].mxu1 }
 0x362   : > { %544 = vst.msk [vmem:[%s361_s25] sm:$0xff] %vm375_vm1, %v540_v21  ;;  %v789_v22 = vpop.f32.mrb[1].mxu1 }
 0x363   : > { %1005 = shalt.err (!%p1002_p6)
}
 0x364   : > { %s1006_s29 = scalar_lea.hbm %s1375_s22, 128  ;;  %s1010_s13 = scalar_lea.hbm %s1429_s5, 512 }
 0x365   : > { %p1007_p2 = scmp.ne.s32.totalorder %s1375_s22, %s1006_s29  ;;  %p1011_p7 = scmp.lt.u32.totalorder %s1375_s22, %s1429_s5 }
 0x366   : > { %p1012_p1 = scmp.lt.u32.totalorder %s1010_s13, %s1006_s29  ;;  %p1014_p9 = scmp.lt.u32.totalorder %s1006_s29, %s1375_s22 }
 0x367   : > { %p1008_p13 = pnand %p1007_p2, %p1458_p0 }
 0x368   : > { %p1013_p8 = por %p1012_p1, %p1011_p7 }
 0x369   : > { %p1009_p3 = pneg %p1008_p13 }
 0x36a   : > { %p1015_p10 = por %p1014_p9, %p1013_p8 }
 0x36c   : > { %p1016_p12 = pnand %p1015_p10, %p1009_p3 }
 0x36e   : > { %1019 = shalt.err (!%p1016_p12)
}
 0x36f   : > { %797 = dma.vmem_to_hbm [thread:$0]  (%p1458_p0), %s1377_s28, 128, %s1375_s22, %s551_s15  }
 0x370 PF: > { %s1459_s27 = sld [smem:[#allocation15_spill]]  ;;  %s1460_s9 = sld [smem:[#allocation19_spill]] }
 0x371   : > { %p818_p11 = scmp.ge.s32.totalorder %s1082_s23, 2 }
 0x376   : > { %s591_s24 = sand.u32 1, %s1459_s27   ;;  %p1461_p5 = scmp.ne.s32.totalorder %s1460_s9, 0 }
 0x377   : > { %s592_s30 = scalar_lea.sflag [#allocation4], %s591_s24 }
 0x378   : > { %p811_p4 = pnand %p818_p11, %p1461_p5 }
 0x37a   : > { %1053 = dma.done.wait (!%p811_p4), %s592_s30, 128  }
 0x37b   : > { %1055 = vsyncadd (!%p811_p4), %s592_s30, 4294967168  ;;  %s601_s26 = scalar_lea.sflag [#allocation10], %s591_s24 }
 0x37c   : > { %1057 = dma.done.wait (!%p811_p4), %s601_s26, 128  }
 0x37d   : > { %1059 = vsyncadd (!%p811_p4), %s601_s26, 4294967168  ;;  %s28_s23 = sadd.s32 1, %s1082_s23   ;;  %s1462_s6 = sld [smem:[#allocation18_spill]] }
 0x37e   : > { %p25_p6 = scmp.ge.s32.totalorder %s28_s23, 6   ;;  %s1463_s21 = sld [smem:[#allocation16_spill]] }
 0x37f   : > { %s1464_s22 = sld [smem:[#allocation17_spill]]  ;;  %s1465_s18 = smov %s1066_s19 }
 0x380   : > { %s1466_s19 = smov %s1070_s20  ;;  %27 = sbr.rel (!%p25_p6) target bundleno = 12 (0xc), region = 125 }
 0x383   : > { %s1467_s20 = smov %s1462_s6 }
 0x387   :  { %606 = vsyncpa [#allocation3], 1 }
 0x388   :  { %608 = vsyncpa [#allocation3 + $0x1], 1 }
 0x389   :  { %609 = vsyncpa [#allocation6], 1 }
 0x38a   :  { %611 = vsyncpa [#allocation6 + $0x1], 1 }
 0x38b   :  { %612 = vsyncpa [#allocation4], 1 }
 0x38c   :  { %614 = vsyncpa [#allocation4 + $0x1], 1 }
 0x38d   :  { %615 = vsyncpa [#allocation10], 1 }
 0x38e   :  { %617 = vsyncpa [#allocation10 + $0x1], 1 }

</bundles_post_ra>
